<compile_context>
chip_gen: v6e
topology: v6e:2x2x1
jax: 0.10.0
libtpu: 0.0.40
codegen_flags: <defaults>
</compile_context>

<pallas_src>
import numpy as np

import jax
import jax.numpy as jnp
from jax import lax
from jax.experimental import pallas as pl
from jax.experimental.pallas import tpu as pltpu

_LANES = 128                 # f32 lanes per vreg row; 128 / 4 = 32 servers per row
_SERVERS_PER_ROW = _LANES // 4
_DEFAULT_TILE_ROWS = 1024    # 1024x128 f32 = 512 KiB per buffer; ~3 MiB live with
                             # 3 operands double-buffered -> fits v7x 32 MiB scoped VMEM
_PALLAS_MIN_SERVERS = 4096   # below this, XLA fusion beats custom-call launch overhead

# Per-resource breakpoints [cpu, mem, bw, storage], computed in f32 so the
# baked-in reciprocals match PyTorch's f32 arithmetic to within ~1 ulp.
_MID = np.array([0.4, 0.5, 0.3, 0.5], np.float32)
_HIGH = np.array([0.8, 0.8, 0.7, 0.8], np.float32)
_INV_MID = (np.float32(1.0) / _MID).astype(np.float32)          # low == 0
_INV_SPAN = (np.float32(1.0) / (_HIGH - _MID)).astype(np.float32)


def _lane_select(res, vals):
    """Select a per-resource constant by (lane index & 3). Splat constants only."""
    v0, v1, v2, v3 = (float(v) for v in vals)
    return jnp.where(res == 0, v0,
           jnp.where(res == 1, v1,
           jnp.where(res == 2, v2, v3))).astype(jnp.float32)


def _fuzzy_kernel(servers_ref, rem_ref, out_ref):
    s = servers_ref[...]                       # (tile_rows, 128) f32
    r = rem_ref[...]                           # (tile_rows, 128) f32
    x = r / s                                  # only per-element divide left

    lane = lax.broadcasted_iota(jnp.int32, x.shape, dimension=1)
    res = lane & 3                             # resource id 0..3 per lane

    mid = _lane_select(res, _MID)
    high = _lane_select(res, _HIGH)
    inv_mid = _lane_select(res, _INV_MID)
    inv_span = _lane_select(res, _INV_SPAN)

    rise = x * inv_mid                         # (x - low) / (mid - low), low == 0
    fall = (high - x) * inv_span               # (high - x) / (high - mid)
    zero = jnp.zeros_like(x)

    # Nested form is equivalent to the torch.where chain (incl. NaN/inf -> 0).
    out_ref[...] = jnp.where(x <= 0.0, zero,
                   jnp.where(x <= mid, rise,
                   jnp.where(x <= high, fall, zero)))


def _pallas_fuzzy(servers_rows, rem_rows, tile_rows):
    rows = servers_rows.shape[0]
    grid = (rows // tile_rows,)
    spec = pl.BlockSpec((tile_rows, _LANES), lambda i: (i, 0))
    return pl.pallas_call(
        _fuzzy_kernel,
        out_shape=jax.ShapeDtypeStruct((rows, _LANES), jnp.float32),
        grid=grid,
        in_specs=[spec, spec],
        out_specs=spec,
        compiler_params=pltpu.CompilerParams(
            dimension_semantics=("parallel",)),
    )(servers_rows, rem_rows)


def _xla_fuzzy(servers4, rem4):
    """Fused-XLA fallback for small N (faithful transcription of the module)."""
    x = rem4 / servers4
    low = jnp.zeros((1, 4), jnp.float32)
    mid = jnp.asarray(_MID).reshape(1, 4)
    high = jnp.asarray(_HIGH).reshape(1, 4)
    return jnp.where(x <= low, 0.0,
           jnp.where((low < x) & (x <= mid), (x - low) / (mid - low),
           jnp.where((mid < x) & (x <= high), (high - x) / (high - mid),
                     0.0))).astype(jnp.float32)


def fuzzy_layer(servers, rem_server, *, use_pallas=None, tile_rows=_DEFAULT_TILE_ROWS):
    """JAX/Pallas equivalent of FuzzyLayer.forward(servers, rem_server)."""
    n = rem_server.shape[0]
    if n == 0:
        # PyTorch: return torch.zeros(1, 4)
        return jnp.zeros((1, 4), dtype=jnp.float32)

    servers4 = servers[:, :4].astype(jnp.float32)
    rem4 = rem_server[:, :4].astype(jnp.float32)

    if use_pallas is None:
        use_pallas = n >= _PALLAS_MIN_SERVERS
    if not use_pallas:
        return _xla_fuzzy(servers4, rem4)

    # --- lane-dense view: (N, 4) -> (rows, 128), 32 servers per row ---
    rows = -(-n // _SERVERS_PER_ROW)                     # ceil(n / 32)
    if rows <= tile_rows:
        tile = rows                                      # single full-array block
        rows_padded = rows
    else:
        tile = max(8, (tile_rows // 8) * 8)              # keep (8,128) divisibility
        rows_padded = -(-rows // tile) * tile
    n_padded = rows_padded * _SERVERS_PER_ROW

    if n_padded != n:
        pad = n_padded - n
        # Pad servers with 1.0 (avoid 0/0), rem with 0.0; padded rows sliced off.
        servers4 = jnp.concatenate(
            [servers4, jnp.ones((pad, 4), jnp.float32)], axis=0)
        rem4 = jnp.concatenate(
            [rem4, jnp.zeros((pad, 4), jnp.float32)], axis=0)

    servers_rows = servers4.reshape(rows_padded, _LANES)
    rem_rows = rem4.reshape(rows_padded, _LANES)

    out_rows = _pallas_fuzzy(servers_rows, rem_rows, tile)
    return out_rows.reshape(n_padded, 4)[:n]


def _reference(servers, rem_server):
    """Pure-JAX reference (faithful to the PyTorch module) for correctness check."""
    if rem_server.shape[0] == 0:
        return jnp.zeros((1, 4), dtype=jnp.float32)

    def tri(x, low, mid, high):
        return jnp.where(
            x <= low, 0.0,
            jnp.where(
                (low < x) & (x <= mid), (x - low) / (mid - low),
                jnp.where((mid < x) & (x <= high), (high - x) / (high - mid), 0.0),
            ),
        )

    ratios = rem_server[:, :4] / servers[:, :4]
    cpu = tri(ratios[:, 0], 0.0, 0.4, 0.8)
    mem = tri(ratios[:, 1], 0.0, 0.5, 0.8)
    bw = tri(ratios[:, 2], 0.0, 0.3, 0.7)
    sto = tri(ratios[:, 3], 0.0, 0.5, 0.8)
    return jnp.stack([cpu, mem, bw, sto], axis=1)


if __name__ == "__main__":
    key = jax.random.PRNGKey(0)
    k1, k2 = jax.random.split(key)

    n_servers = 512
    # Total server capacities: positive values.
    servers = jax.random.uniform(k1, (n_servers, 4), jnp.float32, minval=4.0, maxval=16.0)
    # Remaining capacities: a random fraction of total.
    frac = jax.random.uniform(k2, (n_servers, 4), jnp.float32, minval=0.0, maxval=1.0)
    rem_server = servers * frac

    ref = _reference(servers, rem_server)

    # 1) Pallas path, gridded: 512 servers -> (16, 128) view, tile_rows=8 -> grid=(2,).
    out = fuzzy_layer(servers, rem_server, use_pallas=True, tile_rows=8)
    out = jax.block_until_ready(out)
    assert out.shape == (n_servers, 4)
    assert jnp.allclose(out, ref, atol=1e-6, rtol=1e-5), "gridded Pallas mismatch"

    # 2) Pallas path with row padding: 61 servers -> padded to 64 -> (2, 128) single block.
    out2 = jax.block_until_ready(
        fuzzy_layer(servers[:61], rem_server[:61], use_pallas=True))
    assert out2.shape == (61, 4)
    assert jnp.allclose(out2, ref[:61], atol=1e-6, rtol=1e-5), "padded Pallas mismatch"

    # 3) Small-N auto dispatch -> fused XLA (no custom-call launch overhead).
    out3 = jax.block_until_ready(fuzzy_layer(servers[:8], rem_server[:8]))
    assert jnp.allclose(out3, ref[:8], atol=1e-6, rtol=1e-5), "XLA fallback mismatch"

    print("KERNEL_OK")
</pallas_src>

<mosaic_0001>
module attributes {stable_mosaic.version = 11 : i64} {
  func.func @_fuzzy_kernel(%arg0: i32, %arg1: memref<8x128xf32, #tpu.memory_space<vmem>>, %arg2: memref<8x128xf32, #tpu.memory_space<vmem>>, %arg3: memref<8x128xf32, #tpu.memory_space<vmem>>) attributes {dimension_semantics = [#tpu.dimension_semantics<parallel>], iteration_bounds = array<i64: 2>, scalar_prefetch = 0 : i64, scratch_operands = 0 : i64, tpu.core_type = #tpu.core_type<tc>, window_params = [{transform_indices = @transform_0, window_bounds = array<i64: 8, 128>}, {transform_indices = @transform_1, window_bounds = array<i64: 8, 128>}, {transform_indices = @transform_2, window_bounds = array<i64: 8, 128>}]} {
    %c0 = arith.constant 0 : index
    %c0_0 = arith.constant 0 : index
    %0 = vector.load %arg1[%c0, %c0_0] : memref<8x128xf32, #tpu.memory_space<vmem>>, vector<8x128xf32>
    %c0_1 = arith.constant 0 : index
    %c0_2 = arith.constant 0 : index
    %1 = vector.load %arg2[%c0_1, %c0_2] : memref<8x128xf32, #tpu.memory_space<vmem>>, vector<8x128xf32>
    %2 = arith.divf %1, %0 : vector<8x128xf32>
    %3 = tpu.iota {dimensions = array<i32: 1>} : vector<8x128xi32>
    %c3_i32 = arith.constant 3 : i32
    %4 = vector.broadcast %c3_i32 : i32 to vector<8x128xi32>
    %5 = arith.andi %3, %4 : vector<8x128xi32>
    %c0_i32 = arith.constant 0 : i32
    %6 = vector.broadcast %c0_i32 : i32 to vector<8x128xi32>
    %7 = arith.cmpi eq, %5, %6 : vector<8x128xi32>
    %c1_i32 = arith.constant 1 : i32
    %8 = vector.broadcast %c1_i32 : i32 to vector<8x128xi32>
    %9 = arith.cmpi eq, %5, %8 : vector<8x128xi32>
    %c2_i32 = arith.constant 2 : i32
    %10 = vector.broadcast %c2_i32 : i32 to vector<8x128xi32>
    %11 = arith.cmpi eq, %5, %10 : vector<8x128xi32>
    %cst = arith.constant 3.000000e-01 : f32
    %cst_3 = arith.constant 5.000000e-01 : f32
    %12 = vector.broadcast %cst : f32 to vector<8x128xf32>
    %13 = vector.broadcast %cst_3 : f32 to vector<8x128xf32>
    %14 = arith.select %11, %12, %13 : vector<8x128xi1>, vector<8x128xf32>
    %cst_4 = arith.constant 5.000000e-01 : f32
    %15 = vector.broadcast %cst_4 : f32 to vector<8x128xf32>
    %16 = arith.select %9, %15, %14 : vector<8x128xi1>, vector<8x128xf32>
    %cst_5 = arith.constant 4.000000e-01 : f32
    %17 = vector.broadcast %cst_5 : f32 to vector<8x128xf32>
    %18 = arith.select %7, %17, %16 : vector<8x128xi1>, vector<8x128xf32>
    %c0_i32_6 = arith.constant 0 : i32
    %19 = vector.broadcast %c0_i32_6 : i32 to vector<8x128xi32>
    %20 = arith.cmpi eq, %5, %19 : vector<8x128xi32>
    %c1_i32_7 = arith.constant 1 : i32
    %21 = vector.broadcast %c1_i32_7 : i32 to vector<8x128xi32>
    %22 = arith.cmpi eq, %5, %21 : vector<8x128xi32>
    %c2_i32_8 = arith.constant 2 : i32
    %23 = vector.broadcast %c2_i32_8 : i32 to vector<8x128xi32>
    %24 = arith.cmpi eq, %5, %23 : vector<8x128xi32>
    %cst_9 = arith.constant 0.699999988 : f32
    %cst_10 = arith.constant 8.000000e-01 : f32
    %25 = vector.broadcast %cst_9 : f32 to vector<8x128xf32>
    %26 = vector.broadcast %cst_10 : f32 to vector<8x128xf32>
    %27 = arith.select %24, %25, %26 : vector<8x128xi1>, vector<8x128xf32>
    %cst_11 = arith.constant 8.000000e-01 : f32
    %28 = vector.broadcast %cst_11 : f32 to vector<8x128xf32>
    %29 = arith.select %22, %28, %27 : vector<8x128xi1>, vector<8x128xf32>
    %cst_12 = arith.constant 8.000000e-01 : f32
    %30 = vector.broadcast %cst_12 : f32 to vector<8x128xf32>
    %31 = arith.select %20, %30, %29 : vector<8x128xi1>, vector<8x128xf32>
    %c0_i32_13 = arith.constant 0 : i32
    %32 = vector.broadcast %c0_i32_13 : i32 to vector<8x128xi32>
    %33 = arith.cmpi eq, %5, %32 : vector<8x128xi32>
    %c1_i32_14 = arith.constant 1 : i32
    %34 = vector.broadcast %c1_i32_14 : i32 to vector<8x128xi32>
    %35 = arith.cmpi eq, %5, %34 : vector<8x128xi32>
    %c2_i32_15 = arith.constant 2 : i32
    %36 = vector.broadcast %c2_i32_15 : i32 to vector<8x128xi32>
    %37 = arith.cmpi eq, %5, %36 : vector<8x128xi32>
    %cst_16 = arith.constant 3.33333325 : f32
    %cst_17 = arith.constant 2.000000e+00 : f32
    %38 = vector.broadcast %cst_16 : f32 to vector<8x128xf32>
    %39 = vector.broadcast %cst_17 : f32 to vector<8x128xf32>
    %40 = arith.select %37, %38, %39 : vector<8x128xi1>, vector<8x128xf32>
    %cst_18 = arith.constant 2.000000e+00 : f32
    %41 = vector.broadcast %cst_18 : f32 to vector<8x128xf32>
    %42 = arith.select %35, %41, %40 : vector<8x128xi1>, vector<8x128xf32>
    %cst_19 = arith.constant 2.500000e+00 : f32
    %43 = vector.broadcast %cst_19 : f32 to vector<8x128xf32>
    %44 = arith.select %33, %43, %42 : vector<8x128xi1>, vector<8x128xf32>
    %c0_i32_20 = arith.constant 0 : i32
    %45 = vector.broadcast %c0_i32_20 : i32 to vector<8x128xi32>
    %46 = arith.cmpi eq, %5, %45 : vector<8x128xi32>
    %c1_i32_21 = arith.constant 1 : i32
    %47 = vector.broadcast %c1_i32_21 : i32 to vector<8x128xi32>
    %48 = arith.cmpi eq, %5, %47 : vector<8x128xi32>
    %c2_i32_22 = arith.constant 2 : i32
    %49 = vector.broadcast %c2_i32_22 : i32 to vector<8x128xi32>
    %50 = arith.cmpi eq, %5, %49 : vector<8x128xi32>
    %cst_23 = arith.constant 2.50000024 : f32
    %cst_24 = arith.constant 3.33333325 : f32
    %51 = vector.broadcast %cst_23 : f32 to vector<8x128xf32>
    %52 = vector.broadcast %cst_24 : f32 to vector<8x128xf32>
    %53 = arith.select %50, %51, %52 : vector<8x128xi1>, vector<8x128xf32>
    %cst_25 = arith.constant 3.33333325 : f32
    %54 = vector.broadcast %cst_25 : f32 to vector<8x128xf32>
    %55 = arith.select %48, %54, %53 : vector<8x128xi1>, vector<8x128xf32>
    %cst_26 = arith.constant 2.500000e+00 : f32
    %56 = vector.broadcast %cst_26 : f32 to vector<8x128xf32>
    %57 = arith.select %46, %56, %55 : vector<8x128xi1>, vector<8x128xf32>
    %58 = arith.mulf %2, %44 : vector<8x128xf32>
    %59 = arith.subf %31, %2 : vector<8x128xf32>
    %60 = arith.mulf %59, %57 : vector<8x128xf32>
    %cst_27 = arith.constant 0.000000e+00 : f32
    %61 = vector.broadcast %cst_27 : f32 to vector<8x128xf32>
    %cst_28 = arith.constant 0.000000e+00 : f32
    %62 = vector.broadcast %cst_28 : f32 to vector<8x128xf32>
    %63 = arith.cmpf ole, %2, %62 : vector<8x128xf32>
    %64 = arith.cmpf ole, %2, %18 : vector<8x128xf32>
    %65 = arith.cmpf ole, %2, %31 : vector<8x128xf32>
    %66 = arith.select %65, %60, %61 : vector<8x128xi1>, vector<8x128xf32>
    %67 = arith.select %64, %58, %66 : vector<8x128xi1>, vector<8x128xf32>
    %68 = arith.select %63, %61, %67 : vector<8x128xi1>, vector<8x128xf32>
    %c0_29 = arith.constant 0 : index
    %c0_30 = arith.constant 0 : index
    %69 = vector.load %arg3[%c0_29, %c0_30] : memref<8x128xf32, #tpu.memory_space<vmem>>, vector<8x128xf32>
    tpu.vector_store %arg3[%c0_29, %c0_30], %68 {strides = array<i32>} : memref<8x128xf32, #tpu.memory_space<vmem>>, vector<8x128xf32>,
    return
  }
  func.func @transform_0(%arg0: i32) -> (i32, i32) {
    %c0_i32 = arith.constant 0 : i32
    %c0_i32_0 = arith.constant 0 : i32
    return %arg0, %c0_i32 : i32, i32
  }
  func.func @transform_1(%arg0: i32) -> (i32, i32) {
    %c0_i32 = arith.constant 0 : i32
    %c0_i32_0 = arith.constant 0 : i32
    return %arg0, %c0_i32 : i32, i32
  }
  func.func @transform_2(%arg0: i32) -> (i32, i32) {
    %c0_i32 = arith.constant 0 : i32
    %c0_i32_0 = arith.constant 0 : i32
    return %arg0, %c0_i32 : i32, i32
  }
}

</mosaic_0001>

<bundles_post_ra>
// kernel: tpu_custom_call.1
= control target key start
LH: loop header
LB: loop body
LE: loop exit
PB: predicated region body
PF: predicated region fallthrough
CT: control target
= control target key end

     0   :  { %7 = vsyncpa [#allocation3], 0  ;;  %s760_s0 = inlined_call_operand.hbm [shape: f32[16,128], index: 0, kind: input, shape index: {}]   ;;  %s761_s1 = inlined_call_operand.hbm [shape: f32[16,128], index: 1, kind: input, shape index: {}]   ;;  %s762_s2 = inlined_call_operand.hbm [shape: f32[16,128], index: 2, kind: output, shape index: {}]  }
   0x1   :  { %9 = vsyncpa [#allocation3 + $0x1], 0 }
   0x2   :  { %10 = vsyncpa [#allocation6], 0 }
   0x3   :  { %12 = vsyncpa [#allocation6 + $0x1], 0 }
   0x4   :  { %13 = vsyncpa [#allocation4], 0 }
   0x5   :  { %15 = vsyncpa [#allocation4 + $0x1], 0  ;;  %s555_s9 = smov 0   ;;  %s557_s10 = smov 0  }
   0x6   :  { %s559_s11 = smov 0   ;;  %s561_s12 = smov 0  }
   0x7 LB: > { %s576_s13 = sadd.s32 4294967295, %s531_s12   ;;  %s335_s14 = sadd.s32 4294967294, %s531_s12   ;;  %s531_s12 = sphi %s561_s12, %s781_s12   ;;  %s527_s11 = sphi %s559_s11, %s780_s11   ;;  %s523_s10 = sphi %s557_s10, %s779_s10   ;;  %s519_s9 = sphi %s555_s9, %s778_s9  }
   0x8   : > { %s580_s15 = sadd.s32 1, %s531_s12   ;;  %s28_s16 = sadd.s32 1, %s527_s11 }
   0x9   : > { %s25_s17 = ssub.s32 %s531_s12, %s580_s15  ;;  %p35_p0 = scmp.ne.s32.totalorder %s527_s11, %s523_s10 }
   0xa   : > { %p26_p1 = scmp.eq.s32.totalorder %s25_s17, 0  ;;  %p36_p2 = scmp.eq.s32.totalorder %s531_s12, 0 }
   0xb   : > { %p41_p3 = scmp.ne.s32.totalorder %s523_s10, %s519_s9  ;;  %p42_p4 = scmp.eq.s32.totalorder %s576_s13, 0 }
   0xc   : > { %s592_s18 = scalar_select %p26_p1, %s527_s11, %s28_s16  }
   0xd   : > { %p594_p5 = por %p36_p2, %p35_p0  ;;  %p598_p6 = por %p42_p4, %p41_p3 }
   0xe   : > { %p91_p7 = scmp.eq.s32.totalorder %s576_s13, 1  ;;  %p97_p8 = scmp.eq.s32.totalorder %s335_s14, 1 }
   0xf   : > { %s766_s20 = scalar_select %p598_p6, 1, 0 }
  0x10   : > { %p367_p10 = scmp.lt.s32.totalorder %s531_s12, 2  ;;  %p605_p11 = por %p91_p7, %p35_p0 }
  0x11   : > { %p609_p12 = por %p97_p8, %p41_p3  ;;  %s614_s23 = sand.u32 1, %s527_s11  }
  0x12   : > { %s767_s21 = scalar_select %p605_p11, 1, 0 }
  0x13   : > { %s768_s22 = scalar_select %p609_p12, 1, 0 }
  0x14   : > { %s339_s24 = sshll.u32 %s531_s12, 7  ;;  %s338_s25 = sshll.u32 %s614_s23, 3 }
  0x15   : > { %s623_s28 = scalar_lea.hbm %s760_s0, %s339_s24  ;;  %s121_s29 = scalar_lea.vmem [#allocation2], %s338_s25 }
  0x16   : > { %s128_s30 = sshll.u32 %s121_s29, 4  ;;  %p629_p13 = pnand %p367_p10, %p594_p5  ;;  %s633_s30 = int_to_ptr.vmem [resolvable:$true] %s128_s30 }
  0x17   : > { %s118_s4 = scalar_lea.sflag [#allocation3], %s614_s23  ;;  %s407_s5 = scalar_lea.hbm %s623_s28, 128 }
  0x18   : > { %p408_p2 = scmp.ne.s32.totalorder %s623_s28, %s407_s5  ;;  %p409_p3 = pneg %p629_p13 }
  0x19   : > { %s412_s8 = scalar_lea.hbm %s760_s0, 256  ;;  %p413_p5 = scmp.lt.s32.totalorder %s623_s28, %s760_s0 }
  0x1a   : > { %p410_p4 = pnand %p409_p3, %p408_p2  ;;  %p414_p8 = scmp.lt.s32.totalorder %s412_s8, %s407_s5 }
  0x1c   : > { %p411_p7 = pneg %p410_p4  ;;  %p415_p10 = por %p414_p8, %p413_p5 }
  0x1e   : > { %p416_p9 = pnand %p415_p10, %p411_p7 }
  0x20   : > { %419 = shalt.err (!%p416_p9)
}
  0x21   : > { %s420_s17 = scalar_lea.vmem %s633_s30, 128  ;;  %s533_s19 = smov [#allocation2]  }
  0x22   : > { %p421_p0 = scmp.ne.s32.totalorder %s633_s30, %s420_s17  ;;  %s425_s26 = sshll.u32 %s533_s19, 4  ;;  %s426_s26 = int_to_ptr.vmem [resolvable:$false] %s425_s26 }
  0x23   : > { %s427_s27 = scalar_lea.vmem %s426_s26, 256  ;;  %p428_p1 = scmp.lt.s32.totalorder %s633_s30, %s426_s26 }
  0x24   : > { %p423_p2 = pnand %p421_p0, %p409_p3  ;;  %p429_p12 = scmp.lt.s32.totalorder %s427_s27, %s420_s17 }
  0x26   : > { %p424_p4 = pneg %p423_p2  ;;  %p430_p11 = por %p429_p12, %p428_p1 }
  0x28   : > { %p431_p5 = pnand %p430_p11, %p424_p4 }
  0x2a   : > { %434 = shalt.err (!%p431_p5)
}
  0x2b   : > { %359 = dma.hbm_to_vmem [thread:$0]  (!%p629_p13), %s623_s28, 128, %s633_s30, %s118_s4  }
  0x2c   : > { %p770_p9 = scmp.lt.s32.totalorder %s531_s12, 3  ;;  %p771_p0 = scmp.ge.s32.totalorder %s531_s12, 1 }
  0x2d   : > { %s675_s7 = scalar_lea.hbm %s761_s1, %s339_s24  ;;  %s139_s8 = scalar_lea.vmem [#allocation5], %s338_s25 }
  0x2e   : > { %p666_p7 = pnand %p771_p0, %p770_p9  ;;  %s146_s14 = sshll.u32 %s139_s8, 4  ;;  %s147_s14 = int_to_ptr.vmem [resolvable:$true] %s146_s14 }
  0x2f   : > { %s136_s28 = scalar_lea.sflag [#allocation6], %s614_s23  ;;  %s435_s30 = scalar_lea.hbm %s675_s7, 128 }
  0x30   : > { %s772_s29 = scalar_select %p666_p7, 1, 0 }
  0x31   : > { %p436_p11 = scmp.ne.s32.totalorder %s675_s7, %s435_s30  ;;  %s440_s17 = scalar_lea.hbm %s761_s1, 256 }
  0x32   : > { %p441_p8 = scmp.lt.s32.totalorder %s675_s7, %s761_s1  ;;  %p442_p10 = scmp.lt.s32.totalorder %s440_s17, %s435_s30 }
  0x33   : > { %p438_p12 = pnand %p436_p11, %p409_p3 }
  0x34   : > { %p443_p2 = por %p442_p10, %p441_p8 }
  0x35   : > { %p439_p1 = pneg %p438_p12 }
  0x37   : > { %p444_p4 = pnand %p443_p2, %p439_p1 }
  0x39   : > { %447 = shalt.err (!%p444_p4)
}
  0x3a   : > { %s448_s25 = scalar_lea.vmem %s147_s14, 128  ;;  %s534_s23 = smov [#allocation5]  }
  0x3b   : > { %p449_p5 = scmp.ne.s32.totalorder %s147_s14, %s448_s25  ;;  %s453_s26 = sshll.u32 %s534_s23, 4  ;;  %s454_s26 = int_to_ptr.vmem [resolvable:$false] %s453_s26 }
  0x3c   : > { %s455_s27 = scalar_lea.vmem %s454_s26, 256  ;;  %p456_p11 = scmp.lt.s32.totalorder %s147_s14, %s454_s26 }
  0x3d   : > { %p451_p9 = pnand %p449_p5, %p409_p3  ;;  %p457_p12 = scmp.lt.s32.totalorder %s455_s27, %s448_s25 }
  0x3f   : > { %p452_p0 = pneg %p451_p9  ;;  %p458_p6 = por %p457_p12, %p456_p11 }
  0x41   : > { %p459_p7 = pnand %p458_p6, %p452_p0 }
  0x43   : > { %462 = shalt.err (!%p459_p7)
}
  0x44   : > { %362 = dma.hbm_to_vmem [thread:$0]  (!%p629_p13), %s675_s7, 128, %s147_s14, %s136_s28  }
  0x45   : > { %p773_p1 = scmp.ne.s32.totalorder %s772_s29, 0 }
  0x46   : > { %s701_s5 = sand.u32 (!%p773_p1), 1, %s523_s10   ;;  %p774_p6 = scmp.ne.s32.totalorder (!%p773_p1), %s766_s20, 0 }
  0x47   : > { %155 = sbr.rel (%p773_p1) target bundleno = 116 (0x74), region = 28  ;;  %s704_s6 = sshll.u32 (!%p773_p1), %s701_s5, 3 }
  0x48   : > { %s158_s8 = scalar_lea.sflag (!%p773_p1), [#allocation3], %s701_s5  ;;  %s161_s30 = scalar_lea.vmem (!%p773_p1), [#allocation2], %s704_s6 }
  0x4c   : > { %506 = dma.done.wait (%p774_p6), %s158_s8, 128  }
  0x4d   : > { %508 = vsyncadd (%p774_p6), %s158_s8, 4294967168  ;;  %s167_s3 = scalar_lea.sflag [#allocation6], %s701_s5  ;;  %s170_s29 = scalar_lea.vmem [#allocation5], %s704_s6 }
  0x4e   : > { %510 = dma.done.wait (%p774_p6), %s167_s3, 128  }
  0x4f   : > { %512 = vsyncadd (%p774_p6), %s167_s3, 4294967168  ;;  %v200_v0 = vlaneseq  ;;  %v196_v2 = vld [vmem:[%s161_s30] sm:$0xff]  ;;  %v535_v4 = vmov 0.8   ;;  %v536_v6 = vmov 2.0   ;;  %v537_v8 = vmov 0.5  }
  0x50   : > { %405 = vrcp.f32 %v196_v2  ;;  %v538_v10 = vmov 3.3333333   ;;  %v197_v13 = vld [vmem:[%s170_s29] sm:$0xff]  ;;  %s195_s20 = scalar_lea.vmem [#allocation7], %s704_s6  ;;  %s347_s14 = sshll.u32 %s576_s13, 7 }
  0x51   : > { %v201_v1 = vand.u32 127, %v200_v0  ;;  %s242_s7 = sshll.u32 %s195_s20, 4  ;;  %s240_s16 = scalar_lea.hbm %s762_s2, %s347_s14  ;;  %s720_s7 = int_to_ptr.vmem [resolvable:$true] %s242_s7 }
  0x52   : > { %s229_s17 = scalar_lea.sflag [#allocation4], %s701_s5  ;;  %s463_s24 = scalar_lea.vmem %s720_s7, 128 }
  0x53   : > { %v202_v3 = vand.u32 3, %v201_v1  ;;  %p464_p13 = scmp.ne.s32.totalorder %s720_s7, %s463_s24  ;;  %p775_p3 = scmp.ne.s32.totalorder %s767_s21, 0 }
  0x54   : > { %s539_s13 = smov [#allocation7]  }
  0x55   : > { %vm205_vm0 = vcmp.eq.s32.totalorder %v202_v3, 2  ;;  %vm204_vm1 = vcmp.eq.s32.totalorder %v202_v3, 1  ;;  %vm203_vm2 = vcmp.eq.s32.totalorder %v202_v3, 0  ;;  %p465_p7 = pnand %p464_p13, %p775_p3  ;;  %s467_s19 = sshll.u32 %s539_s13, 4  ;;  %s468_s19 = int_to_ptr.vmem [resolvable:$false] %s467_s19 }
  0x56   : > { %v209_v5 = vsel %vm205_vm0, 0.7, %v535_v4  ;;  %v212_v7 = vsel %vm205_vm0, 3.3333333, %v536_v6  ;;  %v206_v9 = vsel %vm205_vm0, 0.3, %v537_v8  ;;  %p470_p10 = scmp.lt.s32.totalorder %s720_s7, %s468_s19 }
  0x57   : > { %v215_v11 = vsel %vm205_vm0, 2.5000002, %v538_v10  ;;  %v210_v12 = vsel %vm204_vm1, 0.8, %v209_v5  ;;  %v213_v14 = vsel %vm204_vm1, 2.0, %v212_v7  ;;  %v207_v15 = vsel %vm204_vm1, 0.5, %v206_v9  ;;  %p466_p8 = pneg %p465_p7 }
  0x58   : > { %v216_v16 = vsel %vm204_vm1, 3.3333333, %v215_v11  ;;  %v211_v18 = vsel %vm203_vm2, 0.8, %v210_v12  ;;  %v214_v20 = vsel %vm203_vm2, 2.5, %v213_v14  ;;  %s469_s25 = scalar_lea.vmem %s468_s19, 256 }
  0x59   : > { %v208_v21 = vsel %vm203_vm2, 0.4, %v207_v15  ;;  %v217_v22 = vsel %vm203_vm2, 2.5, %v216_v16  ;;  %p471_p2 = scmp.lt.s32.totalorder %s469_s25, %s463_s24 }
  0x5b   : > { %p472_p4 = por %p471_p2, %p470_p10 }
  0x5d   : > { %v406_v17 = vpop.eup %405  ;;  %p473_p5 = pnand %p472_p4, %p466_p8 }
  0x5e   : > { %v199_v19 = vmul.f32 %v406_v17, %v197_v13 }
  0x60   : > { %v219_v23 = vsub.f32 %v211_v18, %v199_v19  ;;  %v218_v24 = vmul.f32 %v214_v20, %v199_v19  ;;  %vm223_vm3 = vcmp.le.f32.partialorder %v199_v19, %v211_v18  ;;  %vm222_vm4 = vcmp.le.f32.partialorder %v199_v19, %v208_v21 }
  0x61   : > { %vm221_vm5 = vcmp.le.f32.partialorder %v199_v19, 0.0 }
  0x62   : > { %v220_v25 = vmul.f32 %v219_v23, %v217_v22 }
  0x64   : > { %v224_v26 = vsel %vm223_vm3, %v220_v25, 0.0 }
  0x65   : > { %v225_v27 = vsel %vm222_vm4, %v218_v24, %v224_v26 }
  0x66   : > { %v226_v28 = vsel %vm221_vm5, 0.0, %v225_v27 }
  0x67   : > { %227 = vst [vmem:[%s195_s20] sm:$0xff] %v226_v28 }
  0x68   : > { %476 = shalt.err (!%p473_p5)
}
  0x69   : > { %s477_s23 = scalar_lea.hbm %s240_s16, 128  ;;  %s481_s5 = scalar_lea.hbm %s762_s2, 256 }
  0x6a   : > { %p478_p9 = scmp.ne.s32.totalorder %s240_s16, %s477_s23  ;;  %p482_p12 = scmp.lt.s32.totalorder %s240_s16, %s762_s2 }
  0x6b   : > { %p483_p1 = scmp.lt.s32.totalorder %s481_s5, %s477_s23 }
  0x6c   : > { %p479_p0 = pnand %p478_p9, %p775_p3 }
  0x6d   : > { %p484_p6 = por %p483_p1, %p482_p12 }
  0x6e   : > { %p480_p11 = pneg %p479_p0 }
  0x70   : > { %p485_p13 = pnand %p484_p6, %p480_p11 }
  0x72   : > { %488 = shalt.err (!%p485_p13)
}
  0x73   : > { %354 = dma.vmem_to_hbm [thread:$0]  (%p775_p3), %s720_s7, 128, %s240_s16, %s229_s17  }
  0x74 PF: > { %s254_s30 = sand.u32 1, %s519_s9   ;;  %p776_p7 = scmp.ne.s32.totalorder %s768_s22, 0 }
  0x75   : > { %p777_p8 = scmp.ge.s32.totalorder %s531_s12, 2  ;;  %s255_s3 = scalar_lea.sflag [#allocation4], %s254_s30 }
  0x77   : > { %p364_p10 = pnand %p777_p8, %p776_p7 }
  0x79   : > { %p365_p2 = pneg %p364_p10 }
  0x7b   : > { %514 = dma.done.wait (%p365_p2), %s255_s3, 128  }
  0x7c   : > { %516 = vsyncadd (%p365_p2), %s255_s3, 4294967168  ;;  %p18_p4 = scmp.ge.s32.totalorder %s580_s15, 4   ;;  %s778_s9 = smov %s523_s10 }
  0x7d   : > { %s779_s10 = smov %s527_s11  ;;  %s780_s11 = smov %s592_s18 }
  0x7e   : > { %s781_s12 = smov %s580_s15  ;;  %20 = sbr.rel (!%p18_p4) target bundleno = 7 (0x7), region = 86 }
  0x83   :  { %260 = vsyncpa [#allocation3], 1 }
  0x84   :  { %262 = vsyncpa [#allocation3 + $0x1], 1 }
  0x85   :  { %263 = vsyncpa [#allocation6], 1 }
  0x86   :  { %265 = vsyncpa [#allocation6 + $0x1], 1 }
  0x87   :  { %266 = vsyncpa [#allocation4], 1 }
  0x88   :  { %268 = vsyncpa [#allocation4 + $0x1], 1 }

</bundles_post_ra>
